<compile_context>
chip_gen: v5e
topology: v5e:2x2
jax: 0.10.0
libtpu: 0.0.40
codegen_flags: <defaults>
</compile_context>

<pallas_src>
import functools

import jax
import jax.numpy as jnp
import numpy as np
from jax.experimental import pallas as pl
from jax.experimental.pallas import tpu as pltpu

EPS = 1e-10

_TARGET_BLOCK_BYTES = 2 * 1024 * 1024   # per streamed input, per pipeline buffer
_VMEM_BUDGET_BYTES = 24 * 1024 * 1024   # all double-buffered blocks together
_VMEM_LIMIT_BYTES = 40 * 1024 * 1024    # stays under v7x's 64 MiB physical VMEM


def _round_up(x, m):
    return ((x + m - 1) // m) * m


def _cdiv(a, b):
    return -(-a // b)


def _macro_token_f_kernel(pred_ref, targ_ref, mask_ref, out_ref, *,
                          n_rows, tile_n, n_steps):
    s = pl.program_id(0)            # parallel split
    i = pl.program_id(1)            # reduction step within the split
    k = pred_ref.shape[-1]

    @pl.when(i == 0)
    def _init():
        out_ref[...] = jnp.zeros_like(out_ref)

    block_idx = s * n_steps + i               # un-clamped logical block index
    rows_left = n_rows - block_idx * tile_n   # <= 0 for clamped padding blocks

    def _accumulate(m, p, t):
        # m: (1, tile_n) f32;  p, t: (tile_n, K) f32.
        # Mask application + the three column sums run on the otherwise-idle
        # MXU; only the p*t product (and the upcasts) touch the VPU.
        pt = p * t
        m2 = m * m
        tp = jnp.dot(m2, pt, preferred_element_type=jnp.float32)   # (1, K)
        st = jnp.dot(m, t, preferred_element_type=jnp.float32)     # (1, K)
        sp = jnp.dot(m, p, preferred_element_type=jnp.float32)     # (1, K)
        out_ref[...] += jnp.concatenate([tp, st, sp], axis=0)[None, :, :]

    @pl.when(rows_left >= tile_n)            # full block: select-free fast path
    def _full():
        _accumulate(mask_ref[...].astype(jnp.float32),
                    pred_ref[...].astype(jnp.float32),
                    targ_ref[...].astype(jnp.float32))

    @pl.when(jnp.logical_and(rows_left > 0, rows_left < tile_n))
    def _tail():                             # ragged last block of the array
        # Out-of-bounds rows/lanes hold unspecified bits (possibly NaN/Inf):
        # kill them with selects; never rely on multiply-by-zero.
        lane_ids = jax.lax.broadcasted_iota(jnp.int32, (1, tile_n), 1)
        m = jnp.where(lane_ids < rows_left,
                      mask_ref[...].astype(jnp.float32), 0.0)
        row_ids = jax.lax.broadcasted_iota(jnp.int32, (tile_n, k), 0)
        valid = row_ids < rows_left
        p = jnp.where(valid, pred_ref[...].astype(jnp.float32), 0.0)
        t = jnp.where(valid, targ_ref[...].astype(jnp.float32), 0.0)
        _accumulate(m, p, t)
    # rows_left <= 0 (clamped duplicate block): contributes nothing.


def macro_token_f_loss(prediction, target, mask, *, beta=0.3, log_like=False,
                       tile_rows=None, n_split=2):
    """prediction, target: (..., K); mask: (...).  Returns scalar f32 loss."""
    K = prediction.shape[-1]
    pred2 = prediction.reshape(-1, K)   # reshapes only -- no astype / no pad
    targ2 = target.reshape(-1, K)       # of the big tensors in the wrapper
    mask2 = mask.reshape(1, -1)         # lane-dense (1, N) row vector
    N = pred2.shape[0]

    # ---- byte-targeted tile sizing with true (padded) VMEM accounting ----
    k_lanes = _round_up(K, 128)                         # lane padding in VMEM
    in_itemsize = max(pred2.dtype.itemsize, targ2.dtype.itemsize)
    if tile_rows is None:
        tile_rows = max(1, _TARGET_BLOCK_BYTES // (k_lanes * in_itemsize))
    # VMEM bytes per row over all double-buffered blocks: lane-padded pred and
    # targ blocks plus the sublane-padded (1, tile_n) mask block.
    bytes_per_row = 2 * (k_lanes * (pred2.dtype.itemsize + targ2.dtype.itemsize)
                         + 8 * mask2.dtype.itemsize)
    cap_rows = max(128, (_VMEM_BUDGET_BYTES // bytes_per_row) // 128 * 128)
    # tile_n must be a multiple of 128: the (1, tile_n) mask block puts rows on
    # the lane axis.
    tile_n = max(128, min(_round_up(tile_rows, 128), cap_rows,
                          _round_up(N, 128)))
    # TODO(synk): for vocabulary-scale K even a minimum 128-row block can blow
    # the VMEM budget; add a K-blocking grid axis (blocks (tile_n, tile_k) and
    # (1, 3, tile_k)) instead of shrinking rows below the mask's 128-lane block.

    total_blocks = _cdiv(N, tile_n)
    n_split = max(1, min(n_split, total_blocks))   # parallel axis (2 TCs, v7x)
    n_steps = _cdiv(total_blocks, n_split)

    def data_map(s, i):
        # Clamp so padding blocks of the last split never DMA past the end of
        # the array; the kernel skips their contribution anyway.
        return (jnp.minimum(s * n_steps + i, total_blocks - 1), 0)

    def mask_map(s, i):
        return (0, jnp.minimum(s * n_steps + i, total_blocks - 1))

    kernel = functools.partial(_macro_token_f_kernel, n_rows=N,
                               tile_n=tile_n, n_steps=n_steps)

    partials = pl.pallas_call(
        kernel,
        out_shape=jax.ShapeDtypeStruct((n_split, 3, K), jnp.float32),
        grid=(n_split, n_steps),
        in_specs=[
            pl.BlockSpec((tile_n, K), data_map),
            pl.BlockSpec((tile_n, K), data_map),
            pl.BlockSpec((1, tile_n), mask_map),
        ],
        out_specs=pl.BlockSpec((1, 3, K), lambda s, i: (s, 0, 0)),
        compiler_params=pltpu.CompilerParams(
            dimension_semantics=("parallel", "arbitrary"),
            vmem_limit_bytes=_VMEM_LIMIT_BYTES),
    )(pred2, targ2, mask2)

    sums = jnp.sum(partials, axis=0)             # (3, K): combine the splits
    tp, sum_t, sum_p = sums[0], sums[1], sums[2]
    f = (1.0 + beta) * tp / (beta * sum_t + sum_p + EPS)
    fmeasure = jnp.mean(f)                       # mean over the K classes
    return -jnp.log(fmeasure) if log_like else 1.0 - fmeasure


def _reference(prediction, target, mask, beta=0.3, log_like=False):
    K = prediction.shape[-1]
    m = mask[..., None].astype(jnp.float32)
    p = prediction.astype(jnp.float32) * m
    t = target.astype(jnp.float32) * m
    TP = (p * t).reshape(-1, K).sum(axis=0)
    H = beta * t.reshape(-1, K).sum(axis=0) + p.reshape(-1, K).sum(axis=0)
    f = (1.0 + beta) * TP / (H + EPS)
    fm = f.mean()
    return -jnp.log(fm) if log_like else 1.0 - fm


if __name__ == "__main__":
    key = jax.random.PRNGKey(0)
    k1, k2, k3, k4, k5, k6 = jax.random.split(key, 6)

    # Case 1: small shapes typical for the module (float32, single tail block).
    B, S, K = 2, 8, 32
    pred_a = jax.nn.sigmoid(jax.random.normal(k1, (B, S, K), jnp.float32))
    targ_a = (jax.random.uniform(k2, (B, S, K)) > 0.5).astype(jnp.float32)
    mask_a = (jax.random.uniform(k3, (B, S)) > 0.2).astype(jnp.float32)
    loss_a = jax.block_until_ready(
        macro_token_f_loss(pred_a, targ_a, mask_a, beta=0.3, log_like=False))
    ref_a = _reference(pred_a, targ_a, mask_a, beta=0.3, log_like=False)
    if not np.allclose(np.asarray(loss_a), np.asarray(ref_a),
                       rtol=1e-5, atol=1e-5):
        raise AssertionError(f"case1 mismatch: pallas={loss_a} ref={ref_a}")

    # Case 2: native bf16 inputs, ragged N (in-kernel tail mask), multiple
    # blocks, the 2-way parallel split and one clamped duplicate block.
    B2, S2 = 3, 100                      # N = 300, not a multiple of 128
    pred_b = jax.nn.sigmoid(
        jax.random.normal(k4, (B2, S2, K), jnp.float32)).astype(jnp.bfloat16)
    targ_b = (jax.random.uniform(k5, (B2, S2, K)) > 0.5).astype(jnp.bfloat16)
    mask_b = (jax.random.uniform(k6, (B2, S2)) > 0.2).astype(jnp.float32)
    loss_b = jax.block_until_ready(
        macro_token_f_loss(pred_b, targ_b, mask_b, beta=0.3, log_like=True,
                           tile_rows=128, n_split=2))
    ref_b = _reference(pred_b, targ_b, mask_b, beta=0.3, log_like=True)
    if not np.allclose(np.asarray(loss_b), np.asarray(ref_b),
                       rtol=1e-4, atol=1e-4):
        raise AssertionError(f"case2 mismatch: pallas={loss_b} ref={ref_b}")

    print("KERNEL_OK")
</pallas_src>

<mosaic_0001>
module attributes {stable_mosaic.version = 11 : i64} {
  func.func @_macro_token_f_kernel(%arg0: i32, %arg1: i32, %arg2: memref<128x32xf32, #tpu.memory_space<vmem>>, %arg3: memref<128x32xf32, #tpu.memory_space<vmem>>, %arg4: memref<1x128xf32, #tpu.memory_space<vmem>>, %arg5: memref<1x3x32xf32, #tpu.memory_space<vmem>>) attributes {dimension_semantics = [#tpu.dimension_semantics<parallel>, #tpu.dimension_semantics<arbitrary>], iteration_bounds = array<i64: 1, 1>, scalar_prefetch = 0 : i64, scratch_operands = 0 : i64, tpu.core_type = #tpu.core_type<tc>, window_params = [{transform_indices = @transform_0, window_bounds = array<i64: 128, 32>}, {transform_indices = @transform_1, window_bounds = array<i64: 128, 32>}, {transform_indices = @transform_2, window_bounds = array<i64: 1, 128>}, {transform_indices = @transform_3, window_bounds = array<i64: 1, 3, 32>}]} {
    %c0_i32 = arith.constant 0 : i32
    %0 = arith.cmpi eq, %arg1, %c0_i32 : i32
    %1 = arith.extui %0 : i1 to i32
    %c0_i32_0 = arith.constant 0 : i32
    %2 = arith.cmpi ne, %1, %c0_i32_0 : i32
    scf.if %2 {
      %cst = arith.constant 0.000000e+00 : f32
      %15 = vector.broadcast %cst : f32 to vector<1x3x32xf32>
      %c0 = arith.constant 0 : index
      %c0_6 = arith.constant 0 : index
      %c0_7 = arith.constant 0 : index
      %16 = vector.load %arg5[%c0, %c0_6, %c0_7] : memref<1x3x32xf32, #tpu.memory_space<vmem>>, vector<1x3x32xf32>
      tpu.vector_store %arg5[%c0, %c0_6, %c0_7], %15 {strides = array<i32>} : memref<1x3x32xf32, #tpu.memory_space<vmem>>, vector<1x3x32xf32>,
    } else {
    }
    %c1_i32 = arith.constant 1 : i32
    %3 = arith.muli %arg0, %c1_i32 : i32
    %4 = arith.addi %3, %arg1 : i32
    %c128_i32 = arith.constant 128 : i32
    %5 = arith.muli %4, %c128_i32 : i32
    %c16_i32 = arith.constant 16 : i32
    %6 = arith.subi %c16_i32, %5 : i32
    %c128_i32_1 = arith.constant 128 : i32
    %7 = arith.cmpi sge, %6, %c128_i32_1 : i32
    %8 = arith.extui %7 : i1 to i32
    %c0_i32_2 = arith.constant 0 : i32
    %9 = arith.cmpi ne, %8, %c0_i32_2 : i32
    scf.if %9 {
      %c0 = arith.constant 0 : index
      %c0_6 = arith.constant 0 : index
      %15 = vector.load %arg4[%c0, %c0_6] : memref<1x128xf32, #tpu.memory_space<vmem>>, vector<1x128xf32>
      %c0_7 = arith.constant 0 : index
      %c0_8 = arith.constant 0 : index
      %16 = vector.load %arg2[%c0_7, %c0_8] : memref<128x32xf32, #tpu.memory_space<vmem>>, vector<128x32xf32>
      %c0_9 = arith.constant 0 : index
      %c0_10 = arith.constant 0 : index
      %17 = vector.load %arg3[%c0_9, %c0_10] : memref<128x32xf32, #tpu.memory_space<vmem>>, vector<128x32xf32>
      %18 = arith.mulf %16, %17 : vector<128x32xf32>
      %19 = arith.mulf %15, %15 : vector<1x128xf32>
      %cst = arith.constant dense<0.000000e+00> : vector<1x32xf32>
      %20 = tpu.matmul %19, %18, %cst {dimension_numbers = #tpu.dot_dimension_numbers<[1], [0], [0], [1], [0, 0, 1, 1], [], []>} : vector<1x128xf32>, vector<128x32xf32>, vector<1x32xf32> -> vector<1x32xf32>
      %cst_11 = arith.constant dense<0.000000e+00> : vector<1x32xf32>
      %21 = tpu.matmul %15, %17, %cst_11 {dimension_numbers = #tpu.dot_dimension_numbers<[1], [0], [0], [1], [0, 0, 1, 1], [], []>} : vector<1x128xf32>, vector<128x32xf32>, vector<1x32xf32> -> vector<1x32xf32>
      %cst_12 = arith.constant dense<0.000000e+00> : vector<1x32xf32>
      %22 = tpu.matmul %15, %16, %cst_12 {dimension_numbers = #tpu.dot_dimension_numbers<[1], [0], [0], [1], [0, 0, 1, 1], [], []>} : vector<1x128xf32>, vector<128x32xf32>, vector<1x32xf32> -> vector<1x32xf32>
      %c0_13 = arith.constant 0 : index
      %c0_14 = arith.constant 0 : index
      %c0_15 = arith.constant 0 : index
      %23 = vector.load %arg5[%c0_13, %c0_14, %c0_15] : memref<1x3x32xf32, #tpu.memory_space<vmem>>, vector<1x3x32xf32>
      %24 = tpu.concatenate %20, %21, %22 in 0 : vector<1x32xf32>, vector<1x32xf32>, vector<1x32xf32> -> vector<3x32xf32>
      %25 = vector.shape_cast %24 : vector<3x32xf32> to vector<1x3x32xf32>
      %26 = arith.addf %23, %25 : vector<1x3x32xf32>
      %c0_16 = arith.constant 0 : index
      %c0_17 = arith.constant 0 : index
      %c0_18 = arith.constant 0 : index
      %27 = vector.load %arg5[%c0_16, %c0_17, %c0_18] : memref<1x3x32xf32, #tpu.memory_space<vmem>>, vector<1x3x32xf32>
      tpu.vector_store %arg5[%c0_16, %c0_17, %c0_18], %26 {strides = array<i32>} : memref<1x3x32xf32, #tpu.memory_space<vmem>>, vector<1x3x32xf32>,
    } else {
    }
    %c0_i32_3 = arith.constant 0 : i32
    %10 = arith.cmpi sgt, %6, %c0_i32_3 : i32
    %c128_i32_4 = arith.constant 128 : i32
    %11 = arith.cmpi slt, %6, %c128_i32_4 : i32
    %12 = arith.andi %10, %11 : i1
    %13 = arith.extui %12 : i1 to i32
    %c0_i32_5 = arith.constant 0 : i32
    %14 = arith.cmpi ne, %13, %c0_i32_5 : i32
    scf.if %14 {
      %15 = tpu.iota {dimensions = array<i32: 1>} : vector<1x128xi32>
      %16 = vector.broadcast %6 : i32 to vector<1x128xi32>
      %17 = arith.cmpi slt, %15, %16 : vector<1x128xi32>
      %c0 = arith.constant 0 : index
      %c0_6 = arith.constant 0 : index
      %18 = vector.load %arg4[%c0, %c0_6] : memref<1x128xf32, #tpu.memory_space<vmem>>, vector<1x128xf32>
      %cst = arith.constant 0.000000e+00 : f32
      %19 = vector.broadcast %cst : f32 to vector<1x128xf32>
      %20 = arith.select %17, %18, %19 : vector<1x128xi1>, vector<1x128xf32>
      %21 = tpu.iota {dimensions = array<i32: 0>} : vector<128x32xi32>
      %22 = vector.broadcast %6 : i32 to vector<128x32xi32>
      %23 = arith.cmpi slt, %21, %22 : vector<128x32xi32>
      %c0_7 = arith.constant 0 : index
      %c0_8 = arith.constant 0 : index
      %24 = vector.load %arg2[%c0_7, %c0_8] : memref<128x32xf32, #tpu.memory_space<vmem>>, vector<128x32xf32>
      %cst_9 = arith.constant 0.000000e+00 : f32
      %25 = vector.broadcast %cst_9 : f32 to vector<128x32xf32>
      %26 = arith.select %23, %24, %25 : vector<128x32xi1>, vector<128x32xf32>
      %c0_10 = arith.constant 0 : index
      %c0_11 = arith.constant 0 : index
      %27 = vector.load %arg3[%c0_10, %c0_11] : memref<128x32xf32, #tpu.memory_space<vmem>>, vector<128x32xf32>
      %cst_12 = arith.constant 0.000000e+00 : f32
      %28 = vector.broadcast %cst_12 : f32 to vector<128x32xf32>
      %29 = arith.select %23, %27, %28 : vector<128x32xi1>, vector<128x32xf32>
      %30 = arith.mulf %26, %29 : vector<128x32xf32>
      %31 = arith.mulf %20, %20 : vector<1x128xf32>
      %cst_13 = arith.constant dense<0.000000e+00> : vector<1x32xf32>
      %32 = tpu.matmul %31, %30, %cst_13 {dimension_numbers = #tpu.dot_dimension_numbers<[1], [0], [0], [1], [0, 0, 1, 1], [], []>} : vector<1x128xf32>, vector<128x32xf32>, vector<1x32xf32> -> vector<1x32xf32>
      %cst_14 = arith.constant dense<0.000000e+00> : vector<1x32xf32>
      %33 = tpu.matmul %20, %29, %cst_14 {dimension_numbers = #tpu.dot_dimension_numbers<[1], [0], [0], [1], [0, 0, 1, 1], [], []>} : vector<1x128xf32>, vector<128x32xf32>, vector<1x32xf32> -> vector<1x32xf32>
      %cst_15 = arith.constant dense<0.000000e+00> : vector<1x32xf32>
      %34 = tpu.matmul %20, %26, %cst_15 {dimension_numbers = #tpu.dot_dimension_numbers<[1], [0], [0], [1], [0, 0, 1, 1], [], []>} : vector<1x128xf32>, vector<128x32xf32>, vector<1x32xf32> -> vector<1x32xf32>
      %c0_16 = arith.constant 0 : index
      %c0_17 = arith.constant 0 : index
      %c0_18 = arith.constant 0 : index
      %35 = vector.load %arg5[%c0_16, %c0_17, %c0_18] : memref<1x3x32xf32, #tpu.memory_space<vmem>>, vector<1x3x32xf32>
      %36 = tpu.concatenate %32, %33, %34 in 0 : vector<1x32xf32>, vector<1x32xf32>, vector<1x32xf32> -> vector<3x32xf32>
      %37 = vector.shape_cast %36 : vector<3x32xf32> to vector<1x3x32xf32>
      %38 = arith.addf %35, %37 : vector<1x3x32xf32>
      %c0_19 = arith.constant 0 : index
      %c0_20 = arith.constant 0 : index
      %c0_21 = arith.constant 0 : index
      %39 = vector.load %arg5[%c0_19, %c0_20, %c0_21] : memref<1x3x32xf32, #tpu.memory_space<vmem>>, vector<1x3x32xf32>
      tpu.vector_store %arg5[%c0_19, %c0_20, %c0_21], %38 {strides = array<i32>} : memref<1x3x32xf32, #tpu.memory_space<vmem>>, vector<1x3x32xf32>,
    } else {
    }
    return
  }
  func.func @transform_0(%arg0: i32, %arg1: i32) -> (i32, i32) {
    %c1_i32 = arith.constant 1 : i32
    %0 = arith.muli %arg0, %c1_i32 : i32
    %1 = arith.addi %0, %arg1 : i32
    %c0_i32 = arith.constant 0 : i32
    %2 = arith.minsi %1, %c0_i32 : i32
    %c0_i32_0 = arith.constant 0 : i32
    %c0_i32_1 = arith.constant 0 : i32
    return %2, %c0_i32_0 : i32, i32
  }
  func.func @transform_1(%arg0: i32, %arg1: i32) -> (i32, i32) {
    %c1_i32 = arith.constant 1 : i32
    %0 = arith.muli %arg0, %c1_i32 : i32
    %1 = arith.addi %0, %arg1 : i32
    %c0_i32 = arith.constant 0 : i32
    %2 = arith.minsi %1, %c0_i32 : i32
    %c0_i32_0 = arith.constant 0 : i32
    %c0_i32_1 = arith.constant 0 : i32
    return %2, %c0_i32_0 : i32, i32
  }
  func.func @transform_2(%arg0: i32, %arg1: i32) -> (i32, i32) {
    %c1_i32 = arith.constant 1 : i32
    %0 = arith.muli %arg0, %c1_i32 : i32
    %1 = arith.addi %0, %arg1 : i32
    %c0_i32 = arith.constant 0 : i32
    %2 = arith.minsi %1, %c0_i32 : i32
    %c0_i32_0 = arith.constant 0 : i32
    %c0_i32_1 = arith.constant 0 : i32
    return %c0_i32_0, %2 : i32, i32
  }
  func.func @transform_3(%arg0: i32, %arg1: i32) -> (i32, i32, i32) {
    %c0_i32 = arith.constant 0 : i32
    %c0_i32_0 = arith.constant 0 : i32
    %c0_i32_1 = arith.constant 0 : i32
    return %arg0, %c0_i32, %c0_i32_0 : i32, i32, i32
  }
}

</mosaic_0001>

<bundles_post_ra>
// kernel: tpu_custom_call.1
= control target key start
LH: loop header
LB: loop body
LE: loop exit
PB: predicated region body
PF: predicated region fallthrough
CT: control target
= control target key end

     0   :  { %8 = vsyncpa [#allocation3], 0  ;;  %s558_s0 = inlined_call_operand.hbm [shape: f32[16,32], index: 0, kind: input, shape index: {}]   ;;  %s559_s1 = inlined_call_operand.hbm [shape: f32[16,32], index: 1, kind: input, shape index: {}]   ;;  %s560_s2 = inlined_call_operand.vmem [shape: f32[1,16], index: 2, kind: input, shape index: {}]   ;;  %s561_s3 = inlined_call_operand.vmem [shape: f32[1,3,32], index: 3, kind: output, shape index: {}]  }
   0x1   :  { %9 = vsyncpa [#allocation5], 0 }
   0x2   :  { %20 = vsyncadd [#allocation3], 1792  ;;  %s25_s14 = sshll.u32 %s558_s0, 4  ;;  %s513_s15 = smov [#allocation2]   ;;  %s26_s14 = int_to_ptr.hbm [resolvable:$true] %s25_s14 }
   0x3   :  { %s27_s16 = sshll.u32 %s513_s15, 4  ;;  %s514_s17 = smov 128   ;;  %s28_s16 = int_to_ptr.vmem [resolvable:$true] %s27_s16 }
   0x4   :  { %s515_s18 = smov 8  }
   0x5   :  { %33 = dma.hbm_to_vmem [thread:$0]  %s26_s14, 256, %s28_s16, [#allocation3], %s514_s17, %s514_s17, %s515_s18  }
   0x6   :  { %44 = vsyncadd [#allocation5], 1792  ;;  %s49_s21 = sshll.u32 %s559_s1, 4  ;;  %s516_s22 = smov [#allocation4]   ;;  %s50_s21 = int_to_ptr.hbm [resolvable:$true] %s49_s21 }
   0x7   :  { %s51_s23 = sshll.u32 %s516_s22, 4  ;;  %s52_s23 = int_to_ptr.vmem [resolvable:$true] %s51_s23 }
   0x8   :  { %57 = dma.hbm_to_vmem [thread:$0]  %s50_s21, 256, %s52_s23, [#allocation5], %s514_s17, %s514_s17, %s515_s18  }
   0x9   :  { %509 = dma.done.wait [#allocation3], 2048  }
   0xa   :  { %510 = vsyncadd [#allocation3], 4294965248 }
   0xb   :  { %511 = dma.done.wait [#allocation5], 2048  }
   0xc   :  { %512 = vsyncadd [#allocation5], 4294965248  ;;  %vm108_vm0 = vcmask 256000   ;;  %v247_v0 = vlaneseq  ;;  %v517_v1 = vmov 0.0   ;;  %v287_v3 = vld [vmem:[#allocation2 + $0x8] sm:$0xff]  ;;  %v286_v4 = vld [vmem:[#allocation2] sm:$0xff] }
   0xd   :  { %109 = vst.msk [vmem:[%s561_s3] sm:$0x7] %vm108_vm0, %v517_v1  ;;  %v251_v5 = vld [vmem:[%s560_s2] sm:$0x1]  ;;  %421 = vmatpush.msra.mxu2 %v287_v3  ;;  %v319_v6 = vld [vmem:[#allocation4 + $0x8] sm:$0xff]  ;;  %vm434_vm2 = vcmask 1040384  }
   0xe   :  { %v248_v2 = vand.u32 127, %v247_v0  ;;  %v318_v7 = vld [vmem:[#allocation4] sm:$0xff]  ;;  %401 = vmatpush.msra.mxu1 %v319_v6  ;;  %v351_v9 = vmul.f32 %v319_v6, %v287_v3  ;;  %vm436_vm3 = vcmask 1041408  }
   0xf   :  { %v350_v10 = vmul.f32 %v318_v7, %v286_v4  ;;  %422 = vmatpush.msra.mxu2 %v286_v4 }
  0x10   :  { %vm250_vm1 = vcmp.lt.s32.totalorder %v248_v2, 16  ;;  %381 = vmatpush.msra.mxu0 %v351_v9  ;;  %402 = vmatpush.msra.mxu1 %v318_v7 }
  0x11   :  { %v252_v8 = vsel %vm250_vm1, %v251_v5, 0.0  ;;  %455 = vmatmul.msk.f32.vlgmr.msra.gmra.mxu2 %vm250_vm1, %v251_v5  ;;  %454 = vmatmul.msk.f32.vlgmr.msra.gmra.mxu1 %vm250_vm1, %v251_v5 }
  0x12   :  { %v366_v11 = vmul.f32 %v252_v8, %v252_v8  ;;  %382 = vmatpush.msra.mxu0 %v350_v10 }
  0x14   :  { %383 = vmatmul.f32.vlgmr.msra.gmra.mxu0 %v366_v11  ;;  %v427_v18 = vld [vmem:[%s561_s3] sm:$0x7] }
  0x8e   :  { %v404_v12 = vpop.f32.mrf.mxu1 }
  0x8f   :  { %v429_v13 = vrot.slane %v404_v12, 7 }
  0x91   :  { %v384_v14 = vpop.f32.mrf.mxu0 }
  0x92   :  { %v435_v16 = vsel %vm434_vm2, %v384_v14, %v429_v13 }
  0x94   :  { %v424_v15 = vpop.f32.mrf.mxu2 }
  0x95   :  { %v432_v17 = vrot.slane %v424_v15, 6 }
  0x97   :  { %v437_v19 = vsel %vm436_vm3, %v435_v16, %v432_v17 }
  0x98   :  { %v438_v20 = vadd.f32 %v437_v19, %v427_v18 }
  0x9a   :  { %440 = vst.msk [vmem:[%s561_s3] sm:$0x7] %vm108_vm0, %v438_v20 }
  0x9b   :  { %445 = vsyncpa [#allocation3], 1 }
  0x9c   :  { %446 = vsyncpa [#allocation5], 1 }

</bundles_post_ra>
